<compile_context>
chip_gen: v5e
topology: v5e:2x2
jax: 0.10.0
libtpu: 0.0.40
codegen_flags: <defaults>
</compile_context>

<pallas_src>
import jax
import jax.numpy as jnp
from jax.experimental import pallas as pl
from jax.experimental.pallas import tpu as pltpu


def _round_up(x, m):
    return ((x + m - 1) // m) * m


def _cdiv(a, b):
    return -(-a // b)


def _mlp_kernel(x_ref, w1_ref, b1_ref, w2_ref, b2_ref, w3_ref, b3_ref, o_ref):
    # Layer 1: bf16 operands on the MXU, f32 accumulate; bias+ReLU in f32 (VPU).
    h1 = jnp.dot(x_ref[...], w1_ref[...], preferred_element_type=jnp.float32)
    h1 = jnp.maximum(h1 + b1_ref[...], 0.0)

    # Layer 2: cast activation to bf16 only for the matmul operand.
    h2 = jnp.dot(h1.astype(w2_ref.dtype), w2_ref[...],
                 preferred_element_type=jnp.float32)
    h2 = jnp.maximum(h2 + b2_ref[...], 0.0)

    # Layer 3: narrow (out_dim-wide) output, no activation.  Only out_dim
    # columns are stored -> minimal HBM writeback.
    out = jnp.dot(h2.astype(w3_ref.dtype), w3_ref[...],
                  preferred_element_type=jnp.float32)
    o_ref[...] = (out + b3_ref[...]).astype(o_ref.dtype)


def domain_discriminator(x, params, *, compute_dtype=jnp.bfloat16, max_tb=2048):
    """x: [B, input_dim] float32.  params: dict of transposed weights / biases."""
    B, input_dim = x.shape
    hidden = params["w1"].shape[1]
    out_dim = params["w3"].shape[1]

    # --- matmul operands in bf16; biases stay f32 (elementwise path) ---------
    xc = x.astype(compute_dtype)
    w1 = params["w1"].astype(compute_dtype)
    w2 = params["w2"].astype(compute_dtype)
    w3 = params["w3"].astype(compute_dtype)
    b1 = params["b1"].astype(jnp.float32).reshape(1, hidden)
    b2 = params["b2"].astype(jnp.float32).reshape(1, hidden)
    b3 = params["b3"].astype(jnp.float32).reshape(1, out_dim)

    # --- batch tiling --------------------------------------------------------
    B16 = _round_up(B, 16)  # bf16 sublane packing

    # Per-step VMEM budget (double-buffered x + out, f32 intermediates).  Keep
    # under the 32 MiB scoped default so the tile also fits v7x's 64 MiB VMEM.
    per_row_bytes = (2 * input_dim * 2      # x double-buffer (bf16)
                     + 2 * out_dim * 4      # out double-buffer (f32)
                     + 2 * hidden * 4)      # f32 intermediates h1 / h2
    tb_budget = max(16, ((24 << 20) // max(per_row_bytes, 1)) // 16 * 16)
    tb_cap = max(16, min(max_tb, tb_budget))

    n_tiles = max(1, _cdiv(B16, tb_cap))
    # v7x has 2 TensorCores: make sure the "parallel" batch axis has >= 2
    # iterations whenever the batch is big enough to split.
    if n_tiles == 1 and B16 >= 32:
        n_tiles = 2
    TB = _round_up(_cdiv(B16, n_tiles), 16)
    B_pad = n_tiles * TB
    if B_pad != B:
        xc = jnp.pad(xc, ((0, B_pad - B), (0, 0)))
    grid = (n_tiles,)

    # --- specs: x/out tiled over batch, weights resident (constant index_map) -
    x_spec = pl.BlockSpec((TB, input_dim), lambda i: (i, 0))
    o_spec = pl.BlockSpec((TB, out_dim), lambda i: (i, 0))
    w1_spec = pl.BlockSpec((input_dim, hidden), lambda i: (0, 0))
    b1_spec = pl.BlockSpec((1, hidden), lambda i: (0, 0))
    w2_spec = pl.BlockSpec((hidden, hidden), lambda i: (0, 0))
    b2_spec = pl.BlockSpec((1, hidden), lambda i: (0, 0))
    w3_spec = pl.BlockSpec((hidden, out_dim), lambda i: (0, 0))
    b3_spec = pl.BlockSpec((1, out_dim), lambda i: (0, 0))

    itemsize = jnp.dtype(compute_dtype).itemsize
    flops = 2 * B_pad * (input_dim * hidden + hidden * hidden + hidden * out_dim)
    bytes_accessed = (
        B_pad * input_dim * itemsize
        + (w1.size + w2.size + w3.size) * itemsize
        + (b1.size + b2.size + b3.size) * 4
        + B_pad * out_dim * 4
    )
    cost = pl.CostEstimate(flops=flops, transcendentals=0,
                           bytes_accessed=bytes_accessed)

    out = pl.pallas_call(
        _mlp_kernel,
        out_shape=jax.ShapeDtypeStruct((B_pad, out_dim), jnp.float32),
        grid=grid,
        in_specs=[x_spec, w1_spec, b1_spec, w2_spec, b2_spec, w3_spec, b3_spec],
        out_specs=o_spec,
        compiler_params=pltpu.CompilerParams(
            dimension_semantics=("parallel",)),
        cost_estimate=cost,
    )(xc, w1, b1, w2, b2, w3, b3)

    # Strip batch padding.
    return out[:B, :].astype(x.dtype)


def init_params(key, input_dim, hidden_dim=128, out_dim=2):
    """Deterministic synthetic parameters (PyTorch nn.Linear shapes, pre-transposed)."""
    ks = jax.random.split(key, 6)
    w1 = jax.random.normal(ks[0], (input_dim, hidden_dim), jnp.float32) * 0.05
    b1 = jax.random.normal(ks[1], (1, hidden_dim), jnp.float32) * 0.05
    w2 = jax.random.normal(ks[2], (hidden_dim, hidden_dim), jnp.float32) * 0.05
    b2 = jax.random.normal(ks[3], (1, hidden_dim), jnp.float32) * 0.05
    w3 = jax.random.normal(ks[4], (hidden_dim, out_dim), jnp.float32) * 0.05
    b3 = jax.random.normal(ks[5], (1, out_dim), jnp.float32) * 0.05
    return dict(w1=w1, b1=b1, w2=w2, b2=b2, w3=w3, b3=b3)


def reference(x, p):
    """Pure-f32 reference (PyTorch semantics)."""
    h1 = jnp.maximum(x @ p["w1"] + p["b1"], 0.0)
    h2 = jnp.maximum(h1 @ p["w2"] + p["b2"], 0.0)
    return h2 @ p["w3"] + p["b3"]


if __name__ == "__main__":
    key = jax.random.PRNGKey(0)
    k_x, k_p = jax.random.split(key)

    batch, input_dim, hidden_dim = 8, 32, 128
    x = jax.random.normal(k_x, (batch, input_dim), jnp.float32)
    params = init_params(k_p, input_dim, hidden_dim)

    out = domain_discriminator(x, params)
    out = jax.block_until_ready(out)

    ref = reference(x, params)
    assert out.shape == (batch, 2), out.shape
    # bf16 matmul operands (f32 accumulation) -> loosened tolerance vs f32 ref.
    assert jnp.allclose(out, ref, atol=3e-2, rtol=3e-2), "mismatch vs reference"

    print("KERNEL_OK")
</pallas_src>

<mosaic_0001>
module attributes {stable_mosaic.version = 11 : i64} {
  func.func @_mlp_kernel(%arg0: i32, %arg1: memref<16x32xbf16, #tpu.memory_space<vmem>>, %arg2: memref<32x128xbf16, #tpu.memory_space<vmem>>, %arg3: memref<1x128xf32, #tpu.memory_space<vmem>>, %arg4: memref<128x128xbf16, #tpu.memory_space<vmem>>, %arg5: memref<1x128xf32, #tpu.memory_space<vmem>>, %arg6: memref<128x2xbf16, #tpu.memory_space<vmem>>, %arg7: memref<1x2xf32, #tpu.memory_space<vmem>>, %arg8: memref<16x2xf32, #tpu.memory_space<vmem>>) attributes {dimension_semantics = [#tpu.dimension_semantics<parallel>], iteration_bounds = array<i64: 1>, scalar_prefetch = 0 : i64, scratch_operands = 0 : i64, tpu.core_type = #tpu.core_type<tc>, window_params = [{transform_indices = @transform_0, window_bounds = array<i64: 16, 32>}, {pipeline_mode = #tpu.pipeline_mode<synchronous>, transform_indices = @transform_1, window_bounds = array<i64: 32, 128>}, {pipeline_mode = #tpu.pipeline_mode<synchronous>, transform_indices = @transform_2, window_bounds = array<i64: 1, 128>}, {pipeline_mode = #tpu.pipeline_mode<synchronous>, transform_indices = @transform_3, window_bounds = array<i64: 128, 128>}, {pipeline_mode = #tpu.pipeline_mode<synchronous>, transform_indices = @transform_4, window_bounds = array<i64: 1, 128>}, {pipeline_mode = #tpu.pipeline_mode<synchronous>, transform_indices = @transform_5, window_bounds = array<i64: 128, 2>}, {pipeline_mode = #tpu.pipeline_mode<synchronous>, transform_indices = @transform_6, window_bounds = array<i64: 1, 2>}, {transform_indices = @transform_7, window_bounds = array<i64: 16, 2>}]} {
    %c0 = arith.constant 0 : index
    %c0_0 = arith.constant 0 : index
    %0 = vector.load %arg1[%c0, %c0_0] : memref<16x32xbf16, #tpu.memory_space<vmem>>, vector<16x32xbf16>
    %c0_1 = arith.constant 0 : index
    %c0_2 = arith.constant 0 : index
    %1 = vector.load %arg2[%c0_1, %c0_2] : memref<32x128xbf16, #tpu.memory_space<vmem>>, vector<32x128xbf16>
    %cst = arith.constant dense<0.000000e+00> : vector<16x128xf32>
    %2 = tpu.matmul %0, %1, %cst {dimension_numbers = #tpu.dot_dimension_numbers<[1], [0], [0], [1], [0, 0, 1, 1], [], []>} : vector<16x32xbf16>, vector<32x128xbf16>, vector<16x128xf32> -> vector<16x128xf32>
    %c0_3 = arith.constant 0 : index
    %c0_4 = arith.constant 0 : index
    %3 = vector.load %arg3[%c0_3, %c0_4] : memref<1x128xf32, #tpu.memory_space<vmem>>, vector<1x128xf32>
    %4 = vector.broadcast %3 : vector<1x128xf32> to vector<16x128xf32>
    %5 = arith.addf %2, %4 : vector<16x128xf32>
    %cst_5 = arith.constant 0.000000e+00 : f32
    %6 = vector.broadcast %cst_5 : f32 to vector<16x128xf32>
    %7 = arith.maximumf %5, %6 : vector<16x128xf32>
    %8 = arith.truncf %7 : vector<16x128xf32> to vector<16x128xbf16>
    %c0_6 = arith.constant 0 : index
    %c0_7 = arith.constant 0 : index
    %9 = vector.load %arg4[%c0_6, %c0_7] : memref<128x128xbf16, #tpu.memory_space<vmem>>, vector<128x128xbf16>
    %cst_8 = arith.constant dense<0.000000e+00> : vector<16x128xf32>
    %10 = tpu.matmul %8, %9, %cst_8 {dimension_numbers = #tpu.dot_dimension_numbers<[1], [0], [0], [1], [0, 0, 1, 1], [], []>} : vector<16x128xbf16>, vector<128x128xbf16>, vector<16x128xf32> -> vector<16x128xf32>
    %c0_9 = arith.constant 0 : index
    %c0_10 = arith.constant 0 : index
    %11 = vector.load %arg5[%c0_9, %c0_10] : memref<1x128xf32, #tpu.memory_space<vmem>>, vector<1x128xf32>
    %12 = vector.broadcast %11 : vector<1x128xf32> to vector<16x128xf32>
    %13 = arith.addf %10, %12 : vector<16x128xf32>
    %cst_11 = arith.constant 0.000000e+00 : f32
    %14 = vector.broadcast %cst_11 : f32 to vector<16x128xf32>
    %15 = arith.maximumf %13, %14 : vector<16x128xf32>
    %16 = arith.truncf %15 : vector<16x128xf32> to vector<16x128xbf16>
    %c0_12 = arith.constant 0 : index
    %c0_13 = arith.constant 0 : index
    %17 = vector.load %arg6[%c0_12, %c0_13] : memref<128x2xbf16, #tpu.memory_space<vmem>>, vector<128x2xbf16>
    %cst_14 = arith.constant dense<0.000000e+00> : vector<16x2xf32>
    %18 = tpu.matmul %16, %17, %cst_14 {dimension_numbers = #tpu.dot_dimension_numbers<[1], [0], [0], [1], [0, 0, 1, 1], [], []>} : vector<16x128xbf16>, vector<128x2xbf16>, vector<16x2xf32> -> vector<16x2xf32>
    %c0_15 = arith.constant 0 : index
    %c0_16 = arith.constant 0 : index
    %19 = vector.load %arg7[%c0_15, %c0_16] : memref<1x2xf32, #tpu.memory_space<vmem>>, vector<1x2xf32>
    %20 = vector.broadcast %19 : vector<1x2xf32> to vector<16x2xf32>
    %21 = arith.addf %18, %20 : vector<16x2xf32>
    %c0_17 = arith.constant 0 : index
    %c0_18 = arith.constant 0 : index
    %22 = vector.load %arg8[%c0_17, %c0_18] : memref<16x2xf32, #tpu.memory_space<vmem>>, vector<16x2xf32>
    tpu.vector_store %arg8[%c0_17, %c0_18], %21 {strides = array<i32>} : memref<16x2xf32, #tpu.memory_space<vmem>>, vector<16x2xf32>,
    return
  }
  func.func @transform_0(%arg0: i32) -> (i32, i32) {
    %c0_i32 = arith.constant 0 : i32
    %c0_i32_0 = arith.constant 0 : i32
    return %arg0, %c0_i32 : i32, i32
  }
  func.func @transform_1(%arg0: i32) -> (i32, i32) {
    %c0_i32 = arith.constant 0 : i32
    %c0_i32_0 = arith.constant 0 : i32
    %c0_i32_1 = arith.constant 0 : i32
    return %c0_i32, %c0_i32_0 : i32, i32
  }
  func.func @transform_2(%arg0: i32) -> (i32, i32) {
    %c0_i32 = arith.constant 0 : i32
    %c0_i32_0 = arith.constant 0 : i32
    %c0_i32_1 = arith.constant 0 : i32
    return %c0_i32, %c0_i32_0 : i32, i32
  }
  func.func @transform_3(%arg0: i32) -> (i32, i32) {
    %c0_i32 = arith.constant 0 : i32
    %c0_i32_0 = arith.constant 0 : i32
    %c0_i32_1 = arith.constant 0 : i32
    return %c0_i32, %c0_i32_0 : i32, i32
  }
  func.func @transform_4(%arg0: i32) -> (i32, i32) {
    %c0_i32 = arith.constant 0 : i32
    %c0_i32_0 = arith.constant 0 : i32
    %c0_i32_1 = arith.constant 0 : i32
    return %c0_i32, %c0_i32_0 : i32, i32
  }
  func.func @transform_5(%arg0: i32) -> (i32, i32) {
    %c0_i32 = arith.constant 0 : i32
    %c0_i32_0 = arith.constant 0 : i32
    %c0_i32_1 = arith.constant 0 : i32
    return %c0_i32, %c0_i32_0 : i32, i32
  }
  func.func @transform_6(%arg0: i32) -> (i32, i32) {
    %c0_i32 = arith.constant 0 : i32
    %c0_i32_0 = arith.constant 0 : i32
    %c0_i32_1 = arith.constant 0 : i32
    return %c0_i32, %c0_i32_0 : i32, i32
  }
  func.func @transform_7(%arg0: i32) -> (i32, i32) {
    %c0_i32 = arith.constant 0 : i32
    %c0_i32_0 = arith.constant 0 : i32
    return %arg0, %c0_i32 : i32, i32
  }
}

</mosaic_0001>

<bundles_post_ra>
// kernel: tpu_custom_call.1
= control target key start
LH: loop header
LB: loop body
LE: loop exit
PB: predicated region body
PF: predicated region fallthrough
CT: control target
= control target key end

     0   :  { %12 = vsyncpa [#allocation3], 0  ;;  %s551_s0 = inlined_call_operand.hbm [shape: bf16[16,32], index: 0, kind: input, shape index: {}]   ;;  %s552_s1 = inlined_call_operand.hbm [shape: bf16[32,128], index: 1, kind: input, shape index: {}]   ;;  %s553_s2 = inlined_call_operand.vmem [shape: f32[1,128], index: 2, kind: input, shape index: {}]   ;;  %s554_s3 = inlined_call_operand.vmem [shape: bf16[128,128], index: 3, kind: input, shape index: {}]   ;;  %s555_s4 = inlined_call_operand.vmem [shape: f32[1,128], index: 4, kind: input, shape index: {}]   ;;  %s556_s5 = inlined_call_operand.vmem [shape: bf16[128,2], index: 5, kind: input, shape index: {}]   ;;  %s557_s6 = inlined_call_operand.vmem [shape: f32[1,2], index: 6, kind: input, shape index: {}]   ;;  %s558_s7 = inlined_call_operand.vmem [shape: f32[16,2], index: 7, kind: output, shape index: {}]  }
   0x1   :  { %s18_s26 = sshll.u32 %s551_s0, 4  ;;  %s19_s26 = int_to_ptr.hbm [resolvable:$true] %s18_s26 }
   0x2   :  { %13 = vsyncpa [#allocation5], 0  ;;  %s438_s27 = smov [#allocation2]   ;;  %s31_s8 = sshll.u32 %s552_s1, 4  ;;  %s32_s8 = int_to_ptr.hbm [resolvable:$true] %s31_s8 }
   0x3   :  { %s20_s28 = sshll.u32 %s438_s27, 4  ;;  %s439_s9 = smov 64   ;;  %s21_s28 = int_to_ptr.vmem [resolvable:$true] %s20_s28 }
   0x4   :  { %s440_s10 = smov 4   ;;  %s441_s11 = smov [#allocation4]  }
   0x5   :  { %26 = dma.hbm_to_vmem [thread:$0]  %s19_s26, 128, %s21_s28, [#allocation3], %s439_s9, %s439_s9, %s440_s10  }
   0x6   :  { %s33_s12 = sshll.u32 %s441_s11, 4  ;;  %s34_s12 = int_to_ptr.vmem [resolvable:$true] %s33_s12 }
   0x7   :  { %39 = dma.hbm_to_vmem [thread:$0]  %s32_s8, 256, %s34_s12, [#allocation5], %s439_s9, %s439_s9, %s440_s10  }
   0x8   :  { %434 = dma.done.wait [#allocation3], 128  }
   0x9   :  { %435 = vsyncadd [#allocation3], 4294967168 }
   0xa   :  { %436 = dma.done.wait [#allocation5], 256  }
   0xb   :  { %437 = vsyncadd [#allocation5], 4294967040  ;;  %v362_v0 = vld [vmem:[#allocation4 + $0x8] sm:$0xff]  ;;  %v370_v1 = vld [vmem:[%s554_s3 + $0x38] sm:$0xff]  ;;  %vm86_vm0 = vcmask 261120   ;;  %vm274_vm1 = vcmask 15360  }
   0xc   :  { %96 = vmatpush.bf16.msra.mxu0 %v362_v0  ;;  %v361_v2 = vld [vmem:[#allocation4] sm:$0xff]  ;;  %175 = vmatpush.bf16.msra.mxu1 %v370_v1  ;;  %v369_v3 = vld [vmem:[%s554_s3 + $0x30] sm:$0xff]  ;;  %v360_v4 = vld [vmem:[#allocation2] sm:$0xff] }
   0xd   :  { %v368_v5 = vld [vmem:[%s554_s3 + $0x28] sm:$0xff]  ;;  %v367_v6 = vld [vmem:[%s554_s3 + $0x20] sm:$0xff]  ;;  %v366_v7 = vld [vmem:[%s554_s3 + $0x18] sm:$0xff] }
   0xe   :  { %v365_v8 = vld [vmem:[%s554_s3 + $0x10] sm:$0xff]  ;;  %v364_v9 = vld [vmem:[%s554_s3 + $0x8] sm:$0xff]  ;;  %v363_v10 = vld [vmem:[%s554_s3] sm:$0xff] }
   0xf   :  { %v378_v11 = vld [vmem:[%s556_s5 + $0x38] sm:$0xff]  ;;  %v377_v12 = vld [vmem:[%s556_s5 + $0x30] sm:$0xff]  ;;  %v376_v13 = vld [vmem:[%s556_s5 + $0x28] sm:$0xff] }
  0x10   :  { %97 = vmatpush.bf16.msra.mxu0 %v361_v2  ;;  %176 = vmatpush.bf16.msra.mxu1 %v369_v3  ;;  %v375_v14 = vld [vmem:[%s556_s5 + $0x20] sm:$0xff]  ;;  %v374_v23 = vld [vmem:[%s556_s5 + $0x18] sm:$0xff]  ;;  %v373_v24 = vld [vmem:[%s556_s5 + $0x10] sm:$0xff] }
  0x11   :  { %260 = vmatpush.bf16.msra.mxu2 %v378_v11  ;;  %v383_v16 = vld [vmem:[%s553_s2] ss:$0 sm:$0xff]  ;;  %v372_v25 = vld [vmem:[%s556_s5 + $0x8] sm:$0xff] }
  0x12   :  { %v371_v26 = vld [vmem:[%s556_s5] sm:$0xff] }
  0x13   :  { %295 = vmatmul.msk.bf16.vlgmr.msra.gmra.mxu0 %vm86_vm0, %v360_v4  ;;  %v384_v28 = vld [vmem:[%s555_s4] ss:$0 sm:$0xff] }
  0x14   :  { %177 = vmatpush.bf16.msra.mxu1 %v368_v5  ;;  %v385_v35 = vld [vmem:[%s557_s6] ss:$0 sm:$0xff] }
  0x15   :  { %261 = vmatpush.bf16.msra.mxu2 %v377_v12 }
  0x18   :  { %178 = vmatpush.bf16.msra.mxu1 %v367_v6 }
  0x19   :  { %262 = vmatpush.bf16.msra.mxu2 %v376_v13 }
  0x1c   :  { %179 = vmatpush.bf16.msra.mxu1 %v366_v7 }
  0x1d   :  { %263 = vmatpush.bf16.msra.mxu2 %v375_v14 }
  0x20   :  { %180 = vmatpush.bf16.msra.mxu1 %v365_v8 }
  0x21   :  { %264 = vmatpush.bf16.msra.mxu2 %v374_v23 }
  0x24   :  { %181 = vmatpush.bf16.msra.mxu1 %v364_v9 }
  0x25   :  { %265 = vmatpush.bf16.msra.mxu2 %v373_v24 }
  0x28   :  { %182 = vmatpush.bf16.msra.mxu1 %v363_v10 }
  0x29   :  { %266 = vmatpush.bf16.msra.mxu2 %v372_v25 }
  0x2d   :  { %267 = vmatpush.bf16.msra.mxu2 %v371_v26 }
  0x90   :  { %v99_v15 = vpop.f32.mrf.mxu0 }
  0x91   :  { %v100_v17 = vadd.f32 %v383_v16, %v99_v15 }
  0x93   :  { %v104_v20 = vmax.f32 %v100_v17, 0.0 }
  0x98   :  { %v101_v18 = vpop.f32.mrf.mxu0 }
  0x99   :  { %v102_v19 = vadd.f32 %v383_v16, %v101_v18 }
  0x9b   :  { %v105_v21 = vmax.f32 %v102_v19, 0.0 }
  0x9d   :  { %v106_v22 = vpack.c.bf16 %v105_v21, %v104_v20 }
  0x9f   :  { %183 = vmatmul.bf16.vlgmr.msra.gmra.mxu1 %v106_v22 }
 0x11c   :  { %v184_v27 = vpop.f32.mrf.mxu1 }
 0x11d   :  { %v185_v29 = vadd.f32 %v384_v28, %v184_v27 }
 0x11f   :  { %v189_v32 = vmax.f32 %v185_v29, 0.0 }
 0x124   :  { %v186_v30 = vpop.f32.mrf.mxu1 }
 0x125   :  { %v187_v31 = vadd.f32 %v384_v28, %v186_v30 }
 0x127   :  { %v190_v33 = vmax.f32 %v187_v31, 0.0 }
 0x129   :  { %v191_v34 = vpack.c.bf16 %v190_v33, %v189_v32 }
 0x12b   :  { %268 = vmatmul.bf16.vlgmr.msra.gmra.mxu2 %v191_v34 }
 0x1ae   :  { %v269_v36 = vpop.f32.mrf.mxu2 }
 0x1af   :  { %v270_v37 = vadd.f32 %v385_v35, %v269_v36 }
 0x1b1   :  { %275 = vst.msk [vmem:[%s558_s7] sm:$0xff] %vm274_vm1, %v270_v37 }
 0x1b6   :  { %v271_v38 = vpop.f32.mrf.mxu2 }
 0x1b7   :  { %v272_v39 = vadd.f32 %v385_v35, %v271_v38 }
 0x1b9   :  { %276 = vst.msk [vmem:[%s558_s7 + $0x8] sm:$0xff] %vm274_vm1, %v272_v39 }
 0x1ba   :  { %281 = vsyncpa [#allocation3], 1 }
 0x1bb   :  { %282 = vsyncpa [#allocation5], 1 }

</bundles_post_ra>
